<compile_context>
chip_gen: v7x
topology: tpu7x:2x2x1
jax: 0.10.0
libtpu: 0.0.40
codegen_flags: <defaults>
</compile_context>

<pallas_src>
import jax
import jax.numpy as jnp
from jax.experimental import pallas as pl
from jax.experimental.pallas import tpu as pltpu


def _round_up(x: int, m: int) -> int:
    return ((x + m - 1) // m) * m


def _stupid_kernel(x0_ref, x1_ref, y_ref, w_ref, b_ref, out_ref):
    # 3-way elementwise add on the VPU, tiny matmul on the MXU, bias add.
    s = x0_ref[...] + x1_ref[...] + y_ref[...]
    acc = jnp.dot(s, w_ref[...], preferred_element_type=jnp.float32)
    out_ref[...] = (acc + b_ref[...]).astype(out_ref.dtype)


def stupid_model_forward(x_list, y, w, b):
    """Pallas equivalent of StupidModel.forward.

    x_list: [x0, x1] each (B, in_features)
    y:      (B, in_features)
    w:      (in_features, out_features)   (nn.Linear weight, pre-transposed)
    b:      (out_features,)
    Returns dict {'x': (B, out_features), 'y': y}
    """
    x0, x1 = x_list
    B, F_in = x0.shape
    F_out = w.shape[1]

    # Batch tile: big enough to amortize per-step pipeline overhead, small
    # enough that double-buffered VMEM (last dim lane-padded to 128 on-chip)
    # stays well under the v7x 32 MiB scoped default. For larger batches make
    # sure there are >= 2 grid steps so both v7x TensorCores get work.
    if B <= 16:
        TB = _round_up(B, 8)
    else:
        TB = min(2048, _round_up(pl.cdiv(B, 2), 8))
    grid = (pl.cdiv(B, TB),)

    b2d = b.reshape(1, F_out)
    itemsize = jnp.dtype(x0.dtype).itemsize

    out = pl.pallas_call(
        _stupid_kernel,
        out_shape=jax.ShapeDtypeStruct((B, F_out), x0.dtype),
        grid=grid,
        in_specs=[
            pl.BlockSpec((TB, F_in), lambda i: (i, 0)),      # x0 (unpadded)
            pl.BlockSpec((TB, F_in), lambda i: (i, 0)),      # x1 (unpadded)
            pl.BlockSpec((TB, F_in), lambda i: (i, 0)),      # y  (unpadded)
            pl.BlockSpec((F_in, F_out), lambda i: (0, 0)),   # weight (resident)
            pl.BlockSpec((1, F_out), lambda i: (0, 0)),      # bias   (resident)
        ],
        out_specs=pl.BlockSpec((TB, F_out), lambda i: (i, 0)),
        compiler_params=pltpu.CompilerParams(
            dimension_semantics=("parallel",),
        ),
        cost_estimate=pl.CostEstimate(
            flops=2 * B * F_in * F_out + 2 * B * F_in,
            transcendentals=0,
            bytes_accessed=(3 * B * F_in + F_in * F_out + F_out
                            + B * F_out) * itemsize,
        ),
    )(x0, x1, y, w, b2d)

    return {"x": out, "y": y}


if __name__ == "__main__":
    key = jax.random.PRNGKey(0)
    k0, k1, k2, kw, kb = jax.random.split(key, 5)

    B, F_in, F_out = 8, 10, 20  # StupidModel: Linear(10, 20)

    x0 = jax.random.normal(k0, (B, F_in), dtype=jnp.float32)
    x1 = jax.random.normal(k1, (B, F_in), dtype=jnp.float32)
    y = jax.random.normal(k2, (B, F_in), dtype=jnp.float32)

    # Deterministic parameter init (shapes per nn.Linear(10, 20)), stored
    # pre-transposed as (in, out).
    bound = 1.0 / (F_in ** 0.5)
    w = jax.random.uniform(kw, (F_in, F_out), minval=-bound, maxval=bound,
                           dtype=jnp.float32)
    b = jax.random.uniform(kb, (F_out,), minval=-bound, maxval=bound,
                           dtype=jnp.float32)

    result = stupid_model_forward([x0, x1], y, w, b)
    jax.block_until_ready(result)

    # Reference check in plain JAX.
    ref = (x0 + x1 + y) @ w + b
    assert result["x"].shape == (B, F_out)
    assert jnp.allclose(result["x"], ref, atol=1e-5, rtol=1e-5)
    assert jnp.array_equal(result["y"], y)

    print("KERNEL_OK")
</pallas_src>

<mosaic_0001>
module attributes {stable_mosaic.version = 11 : i64} {
  func.func @_stupid_kernel(%arg0: i32, %arg1: memref<8x10xf32, #tpu.memory_space<vmem>>, %arg2: memref<8x10xf32, #tpu.memory_space<vmem>>, %arg3: memref<8x10xf32, #tpu.memory_space<vmem>>, %arg4: memref<10x20xf32, #tpu.memory_space<vmem>>, %arg5: memref<1x20xf32, #tpu.memory_space<vmem>>, %arg6: memref<8x20xf32, #tpu.memory_space<vmem>>) attributes {dimension_semantics = [#tpu.dimension_semantics<parallel>], iteration_bounds = array<i64: 1>, scalar_prefetch = 0 : i64, scratch_operands = 0 : i64, tpu.core_type = #tpu.core_type<tc>, window_params = [{transform_indices = @transform_0, window_bounds = array<i64: 8, 10>}, {transform_indices = @transform_1, window_bounds = array<i64: 8, 10>}, {transform_indices = @transform_2, window_bounds = array<i64: 8, 10>}, {pipeline_mode = #tpu.pipeline_mode<synchronous>, transform_indices = @transform_3, window_bounds = array<i64: 10, 20>}, {pipeline_mode = #tpu.pipeline_mode<synchronous>, transform_indices = @transform_4, window_bounds = array<i64: 1, 20>}, {transform_indices = @transform_5, window_bounds = array<i64: 8, 20>}]} {
    %c0 = arith.constant 0 : index
    %c0_0 = arith.constant 0 : index
    %0 = vector.load %arg1[%c0, %c0_0] : memref<8x10xf32, #tpu.memory_space<vmem>>, vector<8x10xf32>
    %c0_1 = arith.constant 0 : index
    %c0_2 = arith.constant 0 : index
    %1 = vector.load %arg2[%c0_1, %c0_2] : memref<8x10xf32, #tpu.memory_space<vmem>>, vector<8x10xf32>
    %2 = arith.addf %0, %1 : vector<8x10xf32>
    %c0_3 = arith.constant 0 : index
    %c0_4 = arith.constant 0 : index
    %3 = vector.load %arg3[%c0_3, %c0_4] : memref<8x10xf32, #tpu.memory_space<vmem>>, vector<8x10xf32>
    %4 = arith.addf %2, %3 : vector<8x10xf32>
    %c0_5 = arith.constant 0 : index
    %c0_6 = arith.constant 0 : index
    %5 = vector.load %arg4[%c0_5, %c0_6] : memref<10x20xf32, #tpu.memory_space<vmem>>, vector<10x20xf32>
    %cst = arith.constant dense<0.000000e+00> : vector<8x20xf32>
    %6 = tpu.matmul %4, %5, %cst {dimension_numbers = #tpu.dot_dimension_numbers<[1], [0], [0], [1], [0, 0, 1, 1], [], []>} : vector<8x10xf32>, vector<10x20xf32>, vector<8x20xf32> -> vector<8x20xf32>
    %c0_7 = arith.constant 0 : index
    %c0_8 = arith.constant 0 : index
    %7 = vector.load %arg5[%c0_7, %c0_8] : memref<1x20xf32, #tpu.memory_space<vmem>>, vector<1x20xf32>
    %8 = vector.broadcast %7 : vector<1x20xf32> to vector<8x20xf32>
    %9 = arith.addf %6, %8 : vector<8x20xf32>
    %c0_9 = arith.constant 0 : index
    %c0_10 = arith.constant 0 : index
    %10 = vector.load %arg6[%c0_9, %c0_10] : memref<8x20xf32, #tpu.memory_space<vmem>>, vector<8x20xf32>
    tpu.vector_store %arg6[%c0_9, %c0_10], %9 {strides = array<i32>} : memref<8x20xf32, #tpu.memory_space<vmem>>, vector<8x20xf32>,
    return
  }
  func.func @transform_0(%arg0: i32) -> (i32, i32) {
    %c0_i32 = arith.constant 0 : i32
    %c0_i32_0 = arith.constant 0 : i32
    return %arg0, %c0_i32 : i32, i32
  }
  func.func @transform_1(%arg0: i32) -> (i32, i32) {
    %c0_i32 = arith.constant 0 : i32
    %c0_i32_0 = arith.constant 0 : i32
    return %arg0, %c0_i32 : i32, i32
  }
  func.func @transform_2(%arg0: i32) -> (i32, i32) {
    %c0_i32 = arith.constant 0 : i32
    %c0_i32_0 = arith.constant 0 : i32
    return %arg0, %c0_i32 : i32, i32
  }
  func.func @transform_3(%arg0: i32) -> (i32, i32) {
    %c0_i32 = arith.constant 0 : i32
    %c0_i32_0 = arith.constant 0 : i32
    %c0_i32_1 = arith.constant 0 : i32
    return %c0_i32, %c0_i32_0 : i32, i32
  }
  func.func @transform_4(%arg0: i32) -> (i32, i32) {
    %c0_i32 = arith.constant 0 : i32
    %c0_i32_0 = arith.constant 0 : i32
    %c0_i32_1 = arith.constant 0 : i32
    return %c0_i32, %c0_i32_0 : i32, i32
  }
  func.func @transform_5(%arg0: i32) -> (i32, i32) {
    %c0_i32 = arith.constant 0 : i32
    %c0_i32_0 = arith.constant 0 : i32
    return %arg0, %c0_i32 : i32, i32
  }
}

</mosaic_0001>

<bundles_post_ra>
// kernel: tpu_custom_call.1
= control target key start
LH: loop header
LB: loop body
LE: loop exit
PB: predicated region body
PF: predicated region fallthrough
CT: control target
= control target key end

     0   :  { %10 = vsyncpa [#allocation3], 0  ;;  %s438_s0 = inlined_call_operand.hbm [shape: f32[8,10], index: 0, kind: input, shape index: {}]   ;;  %s439_s1 = inlined_call_operand.hbm [shape: f32[8,10], index: 1, kind: input, shape index: {}]   ;;  %s440_s2 = inlined_call_operand.hbm [shape: f32[8,10], index: 2, kind: input, shape index: {}]   ;;  %s441_s3 = inlined_call_operand.hbm [shape: f32[10,20], index: 3, kind: input, shape index: {}]   ;;  %s442_s4 = inlined_call_operand.vmem [shape: f32[1,20], index: 4, kind: input, shape index: {}]   ;;  %s443_s5 = inlined_call_operand.hbm [shape: f32[8,20], index: 5, kind: output, shape index: {}]  }
   0x1   :  { %11 = vsyncpa [#allocation6], 0 }
   0x2   :  { %12 = vsyncpa [#allocation9], 0 }
   0x3   :  { %13 = vsyncpa [#allocation4], 0  ;;  %s327_s18 = smov [#allocation5]   ;;  %s328_s20 = smov [#allocation2]  }
   0x4   :  { %s30_s19 = sshll.u32 %s327_s18, 4  ;;  %s20_s21 = sshll.u32 %s328_s20, 4  ;;  %s31_s19 = int_to_ptr.vmem [resolvable:$true] %s30_s19  ;;  %s21_s21 = int_to_ptr.vmem [resolvable:$true] %s20_s21 }
   0x5   :  { %s209_s24 = scalar_lea.hbm %s439_s1, 128 }
   0x6   :  { %p210_p0 = scmp.ne.s32.totalorder %s439_s1, %s209_s24  ;;  %p213_p1 = scmp.lt.u32.totalorder %s209_s24, %s439_s1 }
   0x8   :  { %p215_p2 = pnand %p213_p1, %p210_p0 }
   0xa   :  { %218 = shalt.err (!%p215_p2)
}
   0xb   :  { %s219_s29 = scalar_lea.vmem %s31_s19, 128  ;;  %p224_p4 = scmp.lt.s32.totalorder %s31_s19, %s31_s19 }
   0xc   :  { %p220_p3 = scmp.ne.s32.totalorder %s31_s19, %s219_s29  ;;  %p225_p5 = scmp.lt.s32.totalorder %s219_s29, %s219_s29 }
   0xe   :  { %p226_p6 = por %p225_p5, %p224_p4 }
  0x10   :  { %p227_p7 = pnand %p226_p6, %p220_p3 }
  0x12   :  { %230 = shalt.err (!%p227_p7)
}
  0x13   :  { %33 = dma.hbm_to_vmem [thread:$0]  %s439_s1, 128, %s31_s19, [#allocation6]  }
  0x14   :  { %s231_s9 = scalar_lea.hbm %s438_s0, 128 }
  0x15   :  { %p232_p8 = scmp.ne.s32.totalorder %s438_s0, %s231_s9  ;;  %p235_p9 = scmp.lt.u32.totalorder %s231_s9, %s438_s0 }
  0x17   :  { %p237_p10 = pnand %p235_p9, %p232_p8 }
  0x19   :  { %240 = shalt.err (!%p237_p10)
}
  0x1a   :  { %s241_s14 = scalar_lea.vmem %s21_s21, 128  ;;  %p246_p12 = scmp.lt.s32.totalorder %s21_s21, %s21_s21 }
  0x1b   :  { %p242_p11 = scmp.ne.s32.totalorder %s21_s21, %s241_s14  ;;  %p247_p13 = scmp.lt.s32.totalorder %s241_s14, %s241_s14 }
  0x1d   :  { %p248_p0 = por %p247_p13, %p246_p12 }
  0x1f   :  { %p249_p1 = pnand %p248_p0, %p242_p11 }
  0x21   :  { %252 = shalt.err (!%p249_p1)
}
  0x22   :  { %23 = dma.hbm_to_vmem [thread:$0]  %s438_s0, 128, %s21_s21, [#allocation3]  }
  0x23   :  { %s329_s16 = smov [#allocation7]   ;;  %s330_s18 = smov [#allocation8]  }
  0x24   :  { %s40_s17 = sshll.u32 %s329_s16, 4  ;;  %s49_s19 = sshll.u32 %s330_s18, 4  ;;  %s41_s17 = int_to_ptr.vmem [resolvable:$true] %s40_s17  ;;  %s392_s19 = int_to_ptr.vmem [resolvable:$true] %s49_s19 }
  0x25   :  { %s253_s23 = scalar_lea.hbm %s440_s2, 128 }
  0x26   :  { %p254_p2 = scmp.ne.s32.totalorder %s440_s2, %s253_s23  ;;  %p257_p3 = scmp.lt.u32.totalorder %s253_s23, %s440_s2 }
  0x28   :  { %p259_p4 = pnand %p257_p3, %p254_p2 }
  0x2a   :  { %262 = shalt.err (!%p259_p4)
}
  0x2b   :  { %s263_s0 = scalar_lea.vmem %s41_s17, 128  ;;  %p268_p6 = scmp.lt.s32.totalorder %s41_s17, %s41_s17 }
  0x2c   :  { %p264_p5 = scmp.ne.s32.totalorder %s41_s17, %s263_s0  ;;  %p269_p7 = scmp.lt.s32.totalorder %s263_s0, %s263_s0 }
  0x2e   :  { %p270_p8 = por %p269_p7, %p268_p6 }
  0x30   :  { %p271_p9 = pnand %p270_p8, %p264_p5 }
  0x32   :  { %274 = shalt.err (!%p271_p9)
}
  0x33   :  { %43 = dma.hbm_to_vmem [thread:$0]  %s440_s2, 128, %s41_s17, [#allocation6]  }
  0x34   :  { %s275_s6 = scalar_lea.hbm %s441_s3, 256 }
  0x35   :  { %p276_p10 = scmp.ne.s32.totalorder %s441_s3, %s275_s6  ;;  %p279_p11 = scmp.lt.u32.totalorder %s275_s6, %s441_s3 }
  0x37   :  { %p281_p12 = pnand %p279_p11, %p276_p10 }
  0x39   :  { %284 = shalt.err (!%p281_p12)
}
  0x3a   :  { %s285_s11 = scalar_lea.vmem %s392_s19, 256  ;;  %p290_p0 = scmp.lt.s32.totalorder %s392_s19, %s392_s19 }
  0x3b   :  { %p286_p13 = scmp.ne.s32.totalorder %s392_s19, %s285_s11  ;;  %p291_p1 = scmp.lt.s32.totalorder %s285_s11, %s285_s11 }
  0x3d   :  { %p292_p2 = por %p291_p1, %p290_p0 }
  0x3f   :  { %p293_p3 = pnand %p292_p2, %p286_p13 }
  0x41   :  { %296 = shalt.err (!%p293_p3)
}
  0x42   :  { %s331_s2 = smov 128   ;;  %s332_s12 = smov 8  }
  0x43   :  { %55 = dma.hbm_to_vmem [thread:$0]  %s441_s3, 256, %s392_s19, [#allocation9], %s331_s2, %s331_s2, %s332_s12  }
  0x44   :  { %319 = dma.done.wait [#allocation3], 128  }
  0x45   :  { %320 = vsyncadd [#allocation3], 4294967168 }
  0x46   :  { %321 = dma.done.wait [#allocation6], 256  }
  0x47   :  { %322 = vsyncadd [#allocation6], 4294967040 }
  0x48   :  { %323 = dma.done.wait [#allocation9], 256  }
  0x49   :  { %324 = vsyncadd [#allocation9], 4294967040  ;;  %v333_v0 = vmov 0.0|0.0   ;;  %vm334_vm0 = vmmov 0   ;;  %v335_v1 = vmov 0.0   ;;  %vm88_vm1 = vcmask 1041408  }
  0x4a   :  { %194 = vmatprep.subr.bf16.mxu0 %v333_v0  ;;  %191 = vmatprep.mubr.msk.f32.mxu0 %vm334_vm0, %v335_v1  ;;  %vm336_vm2 = vmmov 1   ;;  %v75_v2 = vld [vmem:[#allocation8] sm:$0xff]  ;;  %v76_v3 = vld [vmem:[#allocation8 + $0x8] sm:$0x3]  ;;  %v71_v6 = vld [vmem:[#allocation5] sm:$0xff]  ;;  %vm84_vm4 = vcmask 80896  }
  0x4b   :  { %vm196_vm3 = vmpackc.low %vm88_vm1, %vm336_vm2  ;;  %v70_v4 = vld [vmem:[#allocation2] sm:$0xff]  ;;  %v195_v5 = vpack.c.bf16 %v76_v3, %v75_v2  ;;  %v73_v7 = vld [vmem:[#allocation7] sm:$0xff]  ;;  %s337_s15 = smov [#allocation10]   ;;  %vm162_vm5 = vcmask 162816  }
  0x4c   :  { %v72_v8 = vadd.f32 %v71_v6, %v70_v4  ;;  %v181_v10 = vld [vmem:[%s442_s4] ss:$0 sm:$0xff]  ;;  %s170_s16 = sshll.u32 %s337_s15, 4  ;;  %s171_s16 = int_to_ptr.vmem [resolvable:$true] %s170_s16 }
  0x4d   :  { %197 = vmatpush3.bf16.msk.msra.mxu0 %vm196_vm3, %v195_v5  ;;  %s297_s17 = scalar_lea.vmem %s171_s16, 128  ;;  %p302_p5 = scmp.lt.s32.totalorder %s171_s16, %s171_s16 }
  0x4e   :  { %v74_v9 = vadd.f32 %v73_v7, %v72_v8  ;;  %p298_p4 = scmp.ne.s32.totalorder %s171_s16, %s297_s17  ;;  %p303_p6 = scmp.lt.s32.totalorder %s297_s17, %s297_s17 }
  0x50   :  { %192 = vmatmul.mubr.msk.f32.vlgmr.msra.gmra.mrb[0].mxu0 %vm84_vm4, %v74_v9  ;;  %p304_p7 = por %p303_p6, %p302_p5 }
  0x52   :  { %p305_p8 = pnand %p304_p7, %p298_p4 }
 0x123   :  { %v158_v11 = vpop.f32.mrb[0].mxu0 }
 0x124   :  { %v159_v12 = vadd.f32 %v181_v10, %v158_v11  ;;  %v193_v13 = vpop.f32.mrb[1].mxu0 }
 0x126   :  { %163 = vst.msk [vmem:[#allocation10] sm:$0xff] %vm162_vm5, %v159_v12 }
 0x127   :  { %308 = shalt.err (!%p305_p8)
}
 0x128   :  { %s309_s20 = scalar_lea.hbm %s443_s5, 128 }
 0x129   :  { %p310_p9 = scmp.ne.s32.totalorder %s443_s5, %s309_s20  ;;  %p313_p10 = scmp.lt.u32.totalorder %s309_s20, %s443_s5 }
 0x12b   :  { %p315_p11 = pnand %p313_p10, %p310_p9 }
 0x12d   :  { %318 = shalt.err (!%p315_p11)
}
 0x12e   :  { %173 = dma.vmem_to_hbm [thread:$0]  %s171_s16, 128, %s443_s5, [#allocation4]  }
 0x12f   :  { %325 = dma.done.wait [#allocation4], 128  }
 0x130   :  { %326 = vsyncadd [#allocation4], 4294967168 }
 0x131   :  { %177 = vsyncpa [#allocation3], 1 }
 0x132   :  { %178 = vsyncpa [#allocation6], 1 }
 0x133   :  { %179 = vsyncpa [#allocation9], 1 }
 0x134   :  { %180 = vsyncpa [#allocation4], 1 }

</bundles_post_ra>
